<compile_context>
chip_gen: v6e
topology: v6e:2x2x1
jax: 0.10.0
libtpu: 0.0.40
codegen_flags: <defaults>
</compile_context>

<pallas_src>
import functools

import jax
import jax.numpy as jnp
import numpy as np
from jax import lax
from jax.experimental import pallas as pl
from jax.experimental.pallas import tpu as pltpu

_LANE = 128
# Conservative: leaves room for double-buffered x tiles + gather scratch under
# v7x's 32 MiB default scoped VMEM (64 MiB physical).
_CENTERS_VMEM_BUDGET_BYTES = 16 * 1024 * 1024


def _round_up(v, m):
    return ((v + m - 1) // m) * m


def _center_loss_resident_kernel(labels_ref, x_ref, centers_ref, o_ref,
                                 gathered_ref, *, tb, batch_size):
    """One (TB, D) batch tile; centers VMEM-resident, gathered in-kernel."""
    i = pl.program_id(0)
    base = i * tb

    # Gather this block's own-center rows: gathered[r, :] = centers[labels[base+r], :]
    def gather_row(r, carry):
        lbl = labels_ref[base + r]               # scalar read from SMEM
        gathered_ref[r, :] = centers_ref[lbl, :]  # dynamic-row VMEM copy
        return carry

    lax.fori_loop(0, tb, gather_row, 0)

    x = x_ref[...].astype(jnp.float32)
    c = gathered_ref[...].astype(jnp.float32)
    diff = x - c
    # Per-sample squared distance, clamped PER SAMPLE (matches torch's
    # element-wise clamp on the surviving distmat entry), then masked row sum.
    dist = jnp.sum(diff * diff, axis=-1, keepdims=True)        # (TB, 1)
    dist = jnp.clip(dist, 1e-12, 1e12)
    row = base + lax.broadcasted_iota(jnp.int32, (tb, 1), 0)
    dist = jnp.where(row < batch_size, dist, 0.0)               # mask padded tail
    partial = jnp.sum(dist)
    o_ref[...] = jnp.zeros(o_ref.shape, jnp.float32) + partial


def _center_loss_pregathered_kernel(x_ref, c_ref, o_ref, *, tb, batch_size):
    """Fallback when centers don't fit VMEM: center rows pre-gathered per sample."""
    i = pl.program_id(0)
    x = x_ref[...].astype(jnp.float32)
    c = c_ref[...].astype(jnp.float32)
    diff = x - c
    dist = jnp.sum(diff * diff, axis=-1, keepdims=True)
    dist = jnp.clip(dist, 1e-12, 1e12)
    row = i * tb + lax.broadcasted_iota(jnp.int32, (tb, 1), 0)
    dist = jnp.where(row < batch_size, dist, 0.0)
    partial = jnp.sum(dist)
    o_ref[...] = jnp.zeros(o_ref.shape, jnp.float32) + partial


@jax.jit
def center_loss(x, labels, centers):
    """Pallas CenterLoss forward.

    Args:
      x:       (B, D) float features (f32 or bf16).
      labels:  (B,) int labels in [0, C).
      centers: (C, D) float class centers.
    Returns:
      scalar float32 loss.
    """
    b, d = x.shape
    num_classes = centers.shape[0]

    row_align = 16 if x.dtype == jnp.bfloat16 else 8
    tb = _round_up(min(512, _round_up(b, row_align)), row_align)
    num_blocks = pl.cdiv(b, tb)
    b_padded = num_blocks * tb

    # Clamp labels so an out-of-range label can never drive an OOB VMEM read.
    labels_i32 = jnp.clip(labels.astype(jnp.int32), 0, num_classes - 1)

    out_shape = jax.ShapeDtypeStruct((num_blocks, 8, _LANE), jnp.float32)
    cost = pl.CostEstimate(
        flops=3 * b * d,
        transcendentals=0,
        bytes_accessed=(b * d + num_classes * d) * x.dtype.itemsize,
    )

    centers_bytes = num_classes * d * centers.dtype.itemsize
    if centers_bytes <= _CENTERS_VMEM_BUDGET_BYTES:
        # Resident-centers path: centers DMA'd to VMEM once, gathered in-kernel.
        labels_padded = jnp.pad(labels_i32, (0, b_padded - b))
        grid_spec = pltpu.PrefetchScalarGridSpec(
            num_scalar_prefetch=1,
            grid=(num_blocks,),
            in_specs=[
                # x: (TB, D) batch tile.
                pl.BlockSpec((tb, d), lambda i, labels: (i, 0)),
                # centers: constant block index -> resident across the grid.
                pl.BlockSpec((num_classes, d), lambda i, labels: (0, 0)),
            ],
            out_specs=pl.BlockSpec((1, 8, _LANE), lambda i, labels: (i, 0, 0)),
            scratch_shapes=[pltpu.VMEM((tb, d), centers.dtype)],
        )
        partials = pl.pallas_call(
            functools.partial(_center_loss_resident_kernel, tb=tb, batch_size=b),
            grid_spec=grid_spec,
            out_shape=out_shape,
            compiler_params=pltpu.CompilerParams(
                dimension_semantics=("parallel",),
            ),
            cost_estimate=cost,
        )(labels_padded, x, centers)
    else:
        # TODO(synk): for very large C*D, replace this wrapper-side XLA gather
        # with a manual deeply-buffered make_async_copy row gather
        # (memory_space=pl.ANY, labels in SMEM) to avoid the extra HBM copy.
        gathered = jnp.take(centers, labels_i32, axis=0)
        grid_spec = pltpu.PrefetchScalarGridSpec(
            num_scalar_prefetch=0,
            grid=(num_blocks,),
            in_specs=[
                pl.BlockSpec((tb, d), lambda i: (i, 0)),
                pl.BlockSpec((tb, d), lambda i: (i, 0)),
            ],
            out_specs=pl.BlockSpec((1, 8, _LANE), lambda i: (i, 0, 0)),
        )
        partials = pl.pallas_call(
            functools.partial(_center_loss_pregathered_kernel, tb=tb, batch_size=b),
            grid_spec=grid_spec,
            out_shape=out_shape,
            compiler_params=pltpu.CompilerParams(
                dimension_semantics=("parallel",),
            ),
            cost_estimate=cost,
        )(x, gathered)

    # Finish the reduction (sum of per-block partials) and the mean over B.
    return jnp.sum(partials[:, 0, 0]) / b


def _reference_center_loss(x, labels, centers):
    # Pure-JAX reference mirroring the PyTorch forward (expanded distmat form).
    b = x.shape[0]
    c = centers.shape[0]
    distmat = (
        jnp.sum(x * x, axis=1, keepdims=True)
        + jnp.sum(centers * centers, axis=1)[None, :]
        - 2.0 * x @ centers.T
    )
    mask = labels[:, None] == jnp.arange(c)[None, :]
    dist = jnp.where(mask, jnp.clip(distmat, 1e-12, 1e12), 0.0)
    return jnp.sum(dist) / b


if __name__ == "__main__":
    key = jax.random.PRNGKey(0)
    k_x, k_c, k_l, k_x2, k_c2, k_l2 = jax.random.split(key, 6)

    # Small demo shape (module's nn.Parameter(torch.randn(C, D)) init).
    batch, num_classes, feat_dim = 8, 32, 128
    centers = jax.random.normal(k_c, (num_classes, feat_dim), dtype=jnp.float32)
    x = jax.random.normal(k_x, (batch, feat_dim), dtype=jnp.float32)
    labels = jax.random.randint(k_l, (batch,), 0, num_classes, dtype=jnp.int32)

    loss = jax.block_until_ready(center_loss(x, labels, centers))
    ref = _reference_center_loss(x, labels, centers)
    np.testing.assert_allclose(np.asarray(loss), np.asarray(ref), rtol=1e-4, atol=1e-4)

    # Secondary check: batch not a multiple of the tile (exercises tail masking).
    b2, c2, d2 = 37, 16, 256
    centers2 = jax.random.normal(k_c2, (c2, d2), dtype=jnp.float32)
    x2 = jax.random.normal(k_x2, (b2, d2), dtype=jnp.float32)
    labels2 = jax.random.randint(k_l2, (b2,), 0, c2, dtype=jnp.int32)
    loss2 = jax.block_until_ready(center_loss(x2, labels2, centers2))
    ref2 = _reference_center_loss(x2, labels2, centers2)
    np.testing.assert_allclose(np.asarray(loss2), np.asarray(ref2), rtol=1e-4, atol=1e-4)

    print("KERNEL_OK")
</pallas_src>

<mosaic_0001>
module attributes {stable_mosaic.version = 11 : i64} {
  func.func @_center_loss_resident_kernel(%arg0: i32, %arg1: memref<8xi32, #tpu.memory_space<smem>>, %arg2: memref<8x128xf32, #tpu.memory_space<vmem>>, %arg3: memref<32x128xf32, #tpu.memory_space<vmem>>, %arg4: memref<1x8x128xf32, #tpu.memory_space<vmem>>, %arg5: memref<8x128xf32, #tpu.memory_space<vmem>>) attributes {dimension_semantics = [#tpu.dimension_semantics<parallel>], iteration_bounds = array<i64: 1>, scalar_prefetch = 1 : i64, scratch_operands = 1 : i64, tpu.core_type = #tpu.core_type<tc>, window_params = [{transform_indices = @transform_0, window_bounds = array<i64: 8, 128>}, {pipeline_mode = #tpu.pipeline_mode<synchronous>, transform_indices = @transform_1, window_bounds = array<i64: 32, 128>}, {transform_indices = @transform_2, window_bounds = array<i64: 1, 8, 128>}]} {
    %c8_i32 = arith.constant 8 : i32
    %0 = arith.muli %arg0, %c8_i32 : i32
    %c0_i32 = arith.constant 0 : i32
    %c8_i32_0 = arith.constant 8 : i32
    %1 = arith.addi %c0_i32, %c8_i32_0 : i32
    %c1_i32 = arith.constant 1 : i32
    scf.for %arg6 = %c0_i32 to %1 step %c1_i32  : i32 {
      %27 = arith.addi %0, %arg6 : i32
      %28 = arith.index_cast %27 : i32 to index
      %29 = memref.load %arg1[%28] : memref<8xi32, #tpu.memory_space<smem>>
      %30 = arith.index_cast %29 : i32 to index
      %c0_14 = arith.constant 0 : index
      %31 = vector.load %arg3[%30, %c0_14] : memref<32x128xf32, #tpu.memory_space<vmem>>, vector<1x128xf32>
      %32 = vector.shape_cast %31 : vector<1x128xf32> to vector<128xf32>
      %33 = arith.index_cast %arg6 : i32 to index
      %c0_15 = arith.constant 0 : index
      %34 = vector.load %arg5[%33, %c0_15] : memref<8x128xf32, #tpu.memory_space<vmem>>, vector<1x128xf32>
      %35 = vector.shape_cast %34 : vector<1x128xf32> to vector<128xf32>
      %36 = vector.shape_cast %32 : vector<128xf32> to vector<1x128xf32>
      tpu.vector_store %arg5[%33, %c0_15], %36 {strides = array<i32>} : memref<8x128xf32, #tpu.memory_space<vmem>>, vector<1x128xf32>,
    }
    %c8_i32_1 = arith.constant 8 : i32
    %c0 = arith.constant 0 : index
    %c0_2 = arith.constant 0 : index
    %2 = vector.load %arg2[%c0, %c0_2] : memref<8x128xf32, #tpu.memory_space<vmem>>, vector<8x128xf32>
    %c0_3 = arith.constant 0 : index
    %c0_4 = arith.constant 0 : index
    %3 = vector.load %arg5[%c0_3, %c0_4] : memref<8x128xf32, #tpu.memory_space<vmem>>, vector<8x128xf32>
    %4 = arith.subf %2, %3 : vector<8x128xf32>
    %5 = arith.mulf %4, %4 : vector<8x128xf32>
    %cst = arith.constant dense<0.000000e+00> : vector<8xf32>
    %6 = vector.multi_reduction <add>, %5, %cst [1] : vector<8x128xf32> to vector<8xf32>
    %7 = vector.shape_cast %6 : vector<8xf32> to vector<8x1xf32>
    %cst_5 = arith.constant 9.99999996E-13 : f32
    %cst_6 = arith.constant 9.99999995E+11 : f32
    %8 = vector.broadcast %cst_5 : f32 to vector<8x1xf32>
    %9 = arith.maximumf %8, %7 : vector<8x1xf32>
    %10 = vector.broadcast %cst_6 : f32 to vector<8x1xf32>
    %11 = arith.minimumf %10, %9 : vector<8x1xf32>
    %12 = tpu.iota {dimensions = array<i32: 0>} : vector<8x1xi32>
    %13 = vector.broadcast %0 : i32 to vector<8x1xi32>
    %14 = arith.addi %13, %12 : vector<8x1xi32>
    %c8_i32_7 = arith.constant 8 : i32
    %15 = vector.broadcast %c8_i32_7 : i32 to vector<8x1xi32>
    %16 = arith.cmpi slt, %14, %15 : vector<8x1xi32>
    %cst_8 = arith.constant 0.000000e+00 : f32
    %17 = vector.broadcast %cst_8 : f32 to vector<8x1xf32>
    %18 = arith.select %16, %11, %17 : vector<8x1xi1>, vector<8x1xf32>
    %19 = vector.shape_cast %18 : vector<8x1xf32> to vector<1x8x1xf32>
    %cst_9 = arith.constant dense<0.000000e+00> : vector<1xf32>
    %20 = vector.multi_reduction <add>, %19, %cst_9 [1, 2] : vector<1x8x1xf32> to vector<1xf32>
    %21 = vector.shape_cast %20 : vector<1xf32> to vector<1x1x1xf32>
    %22 = vector.extract %21[0, 0, 0] : f32 from vector<1x1x1xf32>
    %cst_10 = arith.constant 0.000000e+00 : f32
    %23 = vector.broadcast %cst_10 : f32 to vector<1x8x128xf32>
    %24 = vector.broadcast %22 : f32 to vector<1x8x128xf32>
    %25 = arith.addf %23, %24 : vector<1x8x128xf32>
    %c0_11 = arith.constant 0 : index
    %c0_12 = arith.constant 0 : index
    %c0_13 = arith.constant 0 : index
    %26 = vector.load %arg4[%c0_11, %c0_12, %c0_13] : memref<1x8x128xf32, #tpu.memory_space<vmem>>, vector<1x8x128xf32>
    tpu.vector_store %arg4[%c0_11, %c0_12, %c0_13], %25 {strides = array<i32>} : memref<1x8x128xf32, #tpu.memory_space<vmem>>, vector<1x8x128xf32>,
    return
  }
  func.func @transform_0(%arg0: i32, %arg1: memref<8xi32, #tpu.memory_space<smem>>) -> (i32, i32) {
    %c0_i32 = arith.constant 0 : i32
    %c0_i32_0 = arith.constant 0 : i32
    return %arg0, %c0_i32 : i32, i32
  }
  func.func @transform_1(%arg0: i32, %arg1: memref<8xi32, #tpu.memory_space<smem>>) -> (i32, i32) {
    %c0_i32 = arith.constant 0 : i32
    %c0_i32_0 = arith.constant 0 : i32
    %c0_i32_1 = arith.constant 0 : i32
    return %c0_i32, %c0_i32_0 : i32, i32
  }
  func.func @transform_2(%arg0: i32, %arg1: memref<8xi32, #tpu.memory_space<smem>>) -> (i32, i32, i32) {
    %c0_i32 = arith.constant 0 : i32
    %c0_i32_0 = arith.constant 0 : i32
    %c0_i32_1 = arith.constant 0 : i32
    return %arg0, %c0_i32, %c0_i32_0 : i32, i32, i32
  }
}

</mosaic_0001>

<bundles_post_ra>
// kernel: center_loss.1
= control target key start
LH: loop header
LB: loop body
LE: loop exit
PB: predicated region body
PF: predicated region fallthrough
CT: control target
= control target key end

     0   :  { %s216_s0 = inlined_call_operand.vmem [shape: s32[8], index: 0, kind: input, shape index: {}]   ;;  %s217_s1 = inlined_call_operand.hbm [shape: f32[8,128], index: 1, kind: input, shape index: {}]   ;;  %s218_s2 = inlined_call_operand.hbm [shape: f32[32,128], index: 2, kind: input, shape index: {}]   ;;  %s219_s3 = inlined_call_operand.vmem [shape: f32[1,8,128], index: 3, kind: output, shape index: {}]  }
   0x1   :  { %s8_s14 = sshll.u32 %s216_s0, 4  ;;  %s9_s14 = int_to_ptr.vmem [resolvable:$true] %s8_s14 }
   0x2   :  { %s113_s15 = scalar_lea.vmem %s9_s14, 16  ;;  %p118_p1 = scmp.lt.s32.totalorder %s9_s14, %s9_s14 }
   0x3   :  { %p114_p0 = scmp.ne.s32.totalorder %s9_s14, %s113_s15  ;;  %p119_p2 = scmp.lt.s32.totalorder %s113_s15, %s113_s15 }
   0x5   :  { %p120_p3 = por %p119_p2, %p118_p1 }
   0x7   :  { %p121_p4 = pnand %p120_p3, %p114_p0 }
   0x9   :  { %124 = shalt.err (!%p121_p4)  }
   0xa   :  { %s179_s16 = smov [#allocation4]  }
   0xb   :  { %11 = dma.vmem_to_smem %s9_s14, 16, %s179_s16, [#allocation3] }
   0xc   :  { %169 = dma.done.wait [#allocation3], 16 }
   0xd   :  { %170 = vsyncadd [#allocation3], 4294967280 }
   0xe   :  { %13 = sfence }
   0xf   :  { %14 = vsyncpa [#allocation6], 0 }
  0x10   :  { %15 = vsyncpa [#allocation8], 0  ;;  %s180_s17 = smov [#allocation5]   ;;  %s181_s19 = smov [#allocation7]  }
  0x11   :  { %s22_s18 = sshll.u32 %s180_s17, 4  ;;  %s31_s20 = sshll.u32 %s181_s19, 4  ;;  %s23_s18 = int_to_ptr.vmem [resolvable:$true] %s22_s18  ;;  %s32_s20 = int_to_ptr.vmem [resolvable:$true] %s31_s20 }
  0x12   :  { %s133_s0 = scalar_lea.vmem %s23_s18, 128  ;;  %p138_p6 = scmp.lt.s32.totalorder %s23_s18, %s23_s18 }
  0x13   :  { %p134_p5 = scmp.ne.s32.totalorder %s23_s18, %s133_s0  ;;  %p139_p7 = scmp.lt.s32.totalorder %s133_s0, %s133_s0 }
  0x15   :  { %p140_p8 = por %p139_p7, %p138_p6 }
  0x17   :  { %p141_p9 = pnand %p140_p8, %p134_p5 }
  0x19   :  { %144 = shalt.err (!%p141_p9)
}
  0x1a   :  { %25 = dma.hbm_to_vmem [thread:$0]  %s217_s1, 128, %s23_s18, [#allocation6]  }
  0x1b   :  { %s153_s23 = scalar_lea.vmem %s32_s20, 512  ;;  %p158_p11 = scmp.lt.s32.totalorder %s32_s20, %s32_s20 }
  0x1c   :  { %p154_p10 = scmp.ne.s32.totalorder %s32_s20, %s153_s23  ;;  %p159_p12 = scmp.lt.s32.totalorder %s153_s23, %s153_s23 }
  0x1e   :  { %p160_p13 = por %p159_p12, %p158_p11 }
  0x20   :  { %p161_p0 = pnand %p160_p13, %p154_p10 }
  0x22   :  { %164 = shalt.err (!%p161_p0)
}
  0x23   :  { %s182_s24 = smov 128   ;;  %s183_s25 = smov 8  }
  0x24   :  { %37 = dma.hbm_to_vmem [thread:$0]  %s218_s2, 512, %s32_s20, [#allocation8], %s182_s24, %s182_s24, %s183_s25  }
  0x25   :  { %171 = dma.done.wait [#allocation6], 128  }
  0x26   :  { %172 = vsyncadd [#allocation6], 4294967168 }
  0x27   :  { %173 = dma.done.wait [#allocation8], 512  }
  0x28   :  { %174 = vsyncadd [#allocation8], 4294966784  ;;  %s175_s28 = smov 0  }
  0x29 LB: > { %s52_s1 = sld [smem:[#allocation4 + %s177_s28]]  ;;  %s55_s30 = scalar_lea.vmem [#allocation2], %s177_s28  ;;  %s177_s28 = sphi %s175_s28, %s50_s28  }
  0x2a   : > { %s50_s28 = sadd.s32 1, %s177_s28  }
  0x2b   : > { %p47_p1 = scmp.ge.s32.totalorder %s50_s28, 8  }
  0x2c   :  { %v57_v1 = vld [vmem:[#allocation5] sm:$0xff] (%p47_p1)  ;;  %vm71_vm0 = vcmask (%p47_p1), 7168  }
  0x2d   :  { %49 = sbr.rel (!%p47_p1) target bundleno = 41 (0x29), region = 45 }
  0x2f   : > { %s53_s29 = scalar_lea.vmem [#allocation7], %s52_s1 }
  0x30   : > { %v54_v0 = vld [vmem:[%s53_s29] sm:$0x1] }
  0x31   : > { %56 = vst [vmem:[%s55_s30] sm:$0x1] %v54_v0 }
  0x38   :  { %v58_v2 = vld [vmem:[#allocation2] sm:$0xff] }
  0x39   :  { %v59_v3 = vsub.f32 %v57_v1, %v58_v2 }
  0x3b   :  { %v60_v4 = vmul.f32 %v59_v3, %v59_v3 }
  0x3d   :  { %61 = vadd.xlane.f32.xlu0 %v60_v4 }
  0xc6   :  { %v62_v5 = vpop.xlane.xlu0 %61 }
  0xc7   :  { %v63_v6 = vmax.f32 %v62_v5, 1e-12 }
  0xc9   :  { %v64_v7 = vmin.f32 %v63_v6, 1e+12 }
  0xcb   :  { %v72_v8 = vsel %vm71_vm0, %v64_v7, 0.0 }
  0xcc   :  { %73 = vadd.xlane.f32.xlu0 %v72_v8 }
 0x155   :  { %v74_v9 = vpop.xlane.xlu0 %73 }
 0x156   :  { %v75_v10 = vrot.slane %v74_v9, 4 }
 0x158   :  { %v76_v11 = vadd.f32 %v75_v10, %v74_v9 }
 0x15a   :  { %v77_v12 = vrot.slane %v76_v11, 2 }
 0x15c   :  { %v78_v13 = vadd.f32 %v77_v12, %v76_v11 }
 0x15e   :  { %v79_v14 = vrot.slane %v78_v13, 1 }
 0x160   :  { %v80_v15 = vadd.f32 %v79_v14, %v78_v13 }
 0x162   :  { %98 = vpush %v80_v15 }
 0x193   :  { %s99_s2 = spop %98 }
 0x194   :  { %v82_v16 = vstv %s99_s2 }
 0x195   :  { %84 = vst [vmem:[%s219_s3] sm:$0xff] %v82_v16 }
 0x196   :  { %89 = vsyncpa [#allocation6], 1 }
 0x197   :  { %90 = vsyncpa [#allocation8], 1 }

</bundles_post_ra>
